<compile_context>
chip_gen: v7x
topology: tpu7x:2x2x1
jax: 0.10.0
libtpu: 0.0.40
codegen_flags: <defaults>
</compile_context>

<pallas_src>
import functools

import jax
import jax.numpy as jnp
from jax.experimental import pallas as pl
from jax.experimental.pallas import tpu as pltpu


def _critic_kernel(x_ref, w1_ref, b1_ref, w2_ref, b2_ref, w3_ref, b3_ref,
                   out_ref):
    """Fused 3-layer MLP forward for one batch tile (bf16 MXU, f32 accum)."""
    # Hidden layer 1: relu(x @ W1 + b1)
    h = jnp.dot(x_ref[...], w1_ref[...], preferred_element_type=jnp.float32)
    h = jnp.maximum(h + b1_ref[...], 0.0).astype(jnp.bfloat16)

    # Hidden layer 2: relu(h @ W2 + b2)
    h = jnp.dot(h, w2_ref[...], preferred_element_type=jnp.float32)
    h = jnp.maximum(h + b2_ref[...], 0.0).astype(jnp.bfloat16)

    # Output layer: W3 is (1, H2); contract both last dims (A @ B^T pattern)
    # so the result is (1, tile_b): batch on lanes -> lane-dense store.
    v = jax.lax.dot_general(
        w3_ref[...], h,
        dimension_numbers=(((1,), (1,)), ((), ())),
        preferred_element_type=jnp.float32)
    out_ref[...] = (v + b3_ref[...]).astype(out_ref.dtype)


def _round_up(n, m):
    return (n + m - 1) // m * m


@functools.partial(jax.jit, static_argnames=("tile_b",))
def critic_forward(x, params, *, tile_b=256):
    """Run the Critic forward pass with a fused Pallas kernel.

    Args:
      x:      (B, state_size) f32 state batch (any B; padded internally).
      params: dict with w1 (S,H1), b1 (1,H1), w2 (H1,H2), b2 (1,H2),
              w3 (1,H2)  [PyTorch (out,in) orientation], b3 (1,1).
      tile_b: batch tile.  Must be a multiple of 8; must be a multiple of 128
              whenever it splits the batch (default 256 works everywhere).
    Returns:
      values: (B, 1) f32.
    """
    B, S = x.shape
    w1, b1 = params["w1"], params["b1"]
    w2, b2 = params["w2"], params["b2"]
    w3, b3 = params["w3"], params["b3"]
    H1 = w1.shape[1]
    H2 = w2.shape[1]

    if tile_b % 8 != 0:
        raise ValueError("tile_b must be a multiple of 8 (sublane alignment)")

    # Effective tile: never larger than the (sublane-padded) batch.
    tile = min(tile_b, _round_up(B, 8))
    b_pad = _round_up(B, tile)
    grid = (b_pad // tile,)
    if grid[0] > 1 and tile % 128 != 0:
        raise ValueError("tile_b must be a multiple of 128 when it splits the "
                         "batch (lane-dense output blocks)")

    # Zero-pad the batch so the grid covers it exactly (padded rows discarded).
    if b_pad != B:
        x = jnp.pad(x, ((0, b_pad - B), (0, 0)))

    # bf16 operands for the MXU; biases stay f32 (bias + relu done in f32).
    x_bf16 = x.astype(jnp.bfloat16)
    w1_bf16 = w1.astype(jnp.bfloat16)
    w2_bf16 = w2.astype(jnp.bfloat16)
    w3_bf16 = w3.astype(jnp.bfloat16)

    # Weights/biases broadcast to every batch tile (constant block index),
    # so they stay resident in VMEM across the whole grid.
    def _whole(shape):
        return pl.BlockSpec(shape, lambda i: (0,) * len(shape))

    flops = 2 * b_pad * (S * H1 + H1 * H2 + H2)
    bytes_accessed = (b_pad * S * 2                       # x (bf16)
                      + (S * H1 + H1 * H2 + H2) * 2       # weights (bf16)
                      + (H1 + H2 + 1) * 4                 # biases (f32)
                      + b_pad * 4)                        # output (f32)

    out = pl.pallas_call(
        _critic_kernel,
        out_shape=jax.ShapeDtypeStruct((1, b_pad), jnp.float32),
        grid_spec=pltpu.PrefetchScalarGridSpec(
            num_scalar_prefetch=0,
            grid=grid,
            in_specs=[
                pl.BlockSpec((tile, S), lambda i: (i, 0)),  # x batch tile
                _whole((S, H1)),    # w1
                _whole((1, H1)),    # b1
                _whole((H1, H2)),   # w2
                _whole((1, H2)),    # b2
                _whole((1, H2)),    # w3 (PyTorch (out, in) orientation)
                _whole((1, 1)),     # b3
            ],
            out_specs=pl.BlockSpec((1, tile), lambda i: (0, i)),
        ),
        compiler_params=pltpu.CompilerParams(
            dimension_semantics=("parallel",)),
        cost_estimate=pl.CostEstimate(
            flops=flops, transcendentals=0, bytes_accessed=bytes_accessed),
    )(x_bf16, w1_bf16, b1, w2_bf16, b2, w3_bf16, b3)

    # (1, b_pad) lane-dense result -> (B, 1) like the PyTorch module.
    return out[0, :B].reshape(B, 1)


def init_critic_params(key, state_size, hidden=(256, 256)):
    """U(-1/sqrt(fan_in), 1/sqrt(fan_in)) init, matching nn.Linear defaults.

    w1/w2 stored (in, out); w3 stored (out, in) = (1, H2); biases (1, fan_out).
    """
    h1, h2 = hidden
    dims = [(state_size, h1), (h1, h2), (h2, 1)]
    params = {}
    for n, (fan_in, fan_out) in enumerate(dims, start=1):
        key, kw, kb = jax.random.split(key, 3)
        bound = 1.0 / float(fan_in) ** 0.5
        w = jax.random.uniform(kw, (fan_in, fan_out), jnp.float32, -bound, bound)
        b = jax.random.uniform(kb, (1, fan_out), jnp.float32, -bound, bound)
        if n == 3:
            w = w.T  # output weight kept in PyTorch (out, in) = (1, H2)
        params[f"w{n}"] = w
        params[f"b{n}"] = b
    return params


def critic_reference(x, params):
    """Plain-JAX f32 reference for verification."""
    h = jnp.maximum(x @ params["w1"] + params["b1"], 0.0)
    h = jnp.maximum(h @ params["w2"] + params["b2"], 0.0)
    return h @ params["w3"].T + params["b3"]


if __name__ == "__main__":
    key = jax.random.PRNGKey(0)

    # Small demo shapes consistent with the module defaults: the Critic's
    # hidden sizes are fixed at [256, 256]; the batch / state_size are small.
    batch = 32
    state_size = 16
    hidden = (256, 256)

    key, kx, kp = jax.random.split(key, 3)
    x = jax.random.normal(kx, (batch, state_size), jnp.float32)
    params = init_critic_params(kp, state_size, hidden)

    values = critic_forward(x, params)          # default tile_b=256
    values = jax.block_until_ready(values)

    ref = critic_reference(x, params)
    assert values.shape == (batch, 1), values.shape
    # bf16 matmul operands (f32 accumulation) vs. the pure-f32 reference.
    assert jnp.allclose(values, ref, atol=5e-2, rtol=5e-2), (
        "max abs diff %g" % float(jnp.max(jnp.abs(values - ref))))

    print("KERNEL_OK")
</pallas_src>

<mosaic_0001>
module attributes {stable_mosaic.version = 11 : i64} {
  func.func @_critic_kernel(%arg0: i32, %arg1: memref<32x16xbf16, #tpu.memory_space<vmem>>, %arg2: memref<16x256xbf16, #tpu.memory_space<vmem>>, %arg3: memref<1x256xf32, #tpu.memory_space<vmem>>, %arg4: memref<256x256xbf16, #tpu.memory_space<vmem>>, %arg5: memref<1x256xf32, #tpu.memory_space<vmem>>, %arg6: memref<1x256xbf16, #tpu.memory_space<vmem>>, %arg7: memref<1x1xf32, #tpu.memory_space<vmem>>, %arg8: memref<1x32xf32, #tpu.memory_space<vmem>>) attributes {dimension_semantics = [#tpu.dimension_semantics<parallel>], iteration_bounds = array<i64: 1>, scalar_prefetch = 0 : i64, scratch_operands = 0 : i64, tpu.core_type = #tpu.core_type<tc>, window_params = [{transform_indices = @transform_0, window_bounds = array<i64: 32, 16>}, {pipeline_mode = #tpu.pipeline_mode<synchronous>, transform_indices = @transform_1, window_bounds = array<i64: 16, 256>}, {pipeline_mode = #tpu.pipeline_mode<synchronous>, transform_indices = @transform_2, window_bounds = array<i64: 1, 256>}, {pipeline_mode = #tpu.pipeline_mode<synchronous>, transform_indices = @transform_3, window_bounds = array<i64: 256, 256>}, {pipeline_mode = #tpu.pipeline_mode<synchronous>, transform_indices = @transform_4, window_bounds = array<i64: 1, 256>}, {pipeline_mode = #tpu.pipeline_mode<synchronous>, transform_indices = @transform_5, window_bounds = array<i64: 1, 256>}, {pipeline_mode = #tpu.pipeline_mode<synchronous>, transform_indices = @transform_6, window_bounds = array<i64: 1, 1>}, {transform_indices = @transform_7, window_bounds = array<i64: 1, 32>}]} {
    %c0 = arith.constant 0 : index
    %c0_0 = arith.constant 0 : index
    %0 = vector.load %arg1[%c0, %c0_0] : memref<32x16xbf16, #tpu.memory_space<vmem>>, vector<32x16xbf16>
    %c0_1 = arith.constant 0 : index
    %c0_2 = arith.constant 0 : index
    %1 = vector.load %arg2[%c0_1, %c0_2] : memref<16x256xbf16, #tpu.memory_space<vmem>>, vector<16x256xbf16>
    %cst = arith.constant dense<0.000000e+00> : vector<32x256xf32>
    %2 = tpu.matmul %0, %1, %cst {dimension_numbers = #tpu.dot_dimension_numbers<[1], [0], [0], [1], [0, 0, 1, 1], [], []>} : vector<32x16xbf16>, vector<16x256xbf16>, vector<32x256xf32> -> vector<32x256xf32>
    %c0_3 = arith.constant 0 : index
    %c0_4 = arith.constant 0 : index
    %3 = vector.load %arg3[%c0_3, %c0_4] : memref<1x256xf32, #tpu.memory_space<vmem>>, vector<1x256xf32>
    %4 = vector.broadcast %3 : vector<1x256xf32> to vector<32x256xf32>
    %5 = arith.addf %2, %4 : vector<32x256xf32>
    %cst_5 = arith.constant 0.000000e+00 : f32
    %6 = vector.broadcast %cst_5 : f32 to vector<32x256xf32>
    %7 = arith.maximumf %5, %6 : vector<32x256xf32>
    %8 = arith.truncf %7 : vector<32x256xf32> to vector<32x256xbf16>
    %c0_6 = arith.constant 0 : index
    %c0_7 = arith.constant 0 : index
    %9 = vector.load %arg4[%c0_6, %c0_7] : memref<256x256xbf16, #tpu.memory_space<vmem>>, vector<256x256xbf16>
    %cst_8 = arith.constant dense<0.000000e+00> : vector<32x256xf32>
    %10 = tpu.matmul %8, %9, %cst_8 {dimension_numbers = #tpu.dot_dimension_numbers<[1], [0], [0], [1], [0, 0, 1, 1], [], []>} : vector<32x256xbf16>, vector<256x256xbf16>, vector<32x256xf32> -> vector<32x256xf32>
    %c0_9 = arith.constant 0 : index
    %c0_10 = arith.constant 0 : index
    %11 = vector.load %arg5[%c0_9, %c0_10] : memref<1x256xf32, #tpu.memory_space<vmem>>, vector<1x256xf32>
    %12 = vector.broadcast %11 : vector<1x256xf32> to vector<32x256xf32>
    %13 = arith.addf %10, %12 : vector<32x256xf32>
    %cst_11 = arith.constant 0.000000e+00 : f32
    %14 = vector.broadcast %cst_11 : f32 to vector<32x256xf32>
    %15 = arith.maximumf %13, %14 : vector<32x256xf32>
    %16 = arith.truncf %15 : vector<32x256xf32> to vector<32x256xbf16>
    %c0_12 = arith.constant 0 : index
    %c0_13 = arith.constant 0 : index
    %17 = vector.load %arg6[%c0_12, %c0_13] : memref<1x256xbf16, #tpu.memory_space<vmem>>, vector<1x256xbf16>
    %cst_14 = arith.constant dense<0.000000e+00> : vector<1x32xf32>
    %18 = tpu.matmul %17, %16, %cst_14 {dimension_numbers = #tpu.dot_dimension_numbers<[1], [1], [0], [0], [0, 0, 1, 0], [], []>} : vector<1x256xbf16>, vector<32x256xbf16>, vector<1x32xf32> -> vector<1x32xf32>
    %c0_15 = arith.constant 0 : index
    %c0_16 = arith.constant 0 : index
    %19 = vector.load %arg7[%c0_15, %c0_16] : memref<1x1xf32, #tpu.memory_space<vmem>>, vector<1x1xf32>
    %20 = vector.broadcast %19 : vector<1x1xf32> to vector<1x32xf32>
    %21 = arith.addf %18, %20 : vector<1x32xf32>
    %c0_17 = arith.constant 0 : index
    %c0_18 = arith.constant 0 : index
    %22 = vector.load %arg8[%c0_17, %c0_18] : memref<1x32xf32, #tpu.memory_space<vmem>>, vector<1x32xf32>
    tpu.vector_store %arg8[%c0_17, %c0_18], %21 {strides = array<i32>} : memref<1x32xf32, #tpu.memory_space<vmem>>, vector<1x32xf32>,
    return
  }
  func.func @transform_0(%arg0: i32) -> (i32, i32) {
    %c0_i32 = arith.constant 0 : i32
    %c0_i32_0 = arith.constant 0 : i32
    return %arg0, %c0_i32 : i32, i32
  }
  func.func @transform_1(%arg0: i32) -> (i32, i32) {
    %c0_i32 = arith.constant 0 : i32
    %c0_i32_0 = arith.constant 0 : i32
    %c0_i32_1 = arith.constant 0 : i32
    return %c0_i32, %c0_i32_0 : i32, i32
  }
  func.func @transform_2(%arg0: i32) -> (i32, i32) {
    %c0_i32 = arith.constant 0 : i32
    %c0_i32_0 = arith.constant 0 : i32
    %c0_i32_1 = arith.constant 0 : i32
    return %c0_i32, %c0_i32_0 : i32, i32
  }
  func.func @transform_3(%arg0: i32) -> (i32, i32) {
    %c0_i32 = arith.constant 0 : i32
    %c0_i32_0 = arith.constant 0 : i32
    %c0_i32_1 = arith.constant 0 : i32
    return %c0_i32, %c0_i32_0 : i32, i32
  }
  func.func @transform_4(%arg0: i32) -> (i32, i32) {
    %c0_i32 = arith.constant 0 : i32
    %c0_i32_0 = arith.constant 0 : i32
    %c0_i32_1 = arith.constant 0 : i32
    return %c0_i32, %c0_i32_0 : i32, i32
  }
  func.func @transform_5(%arg0: i32) -> (i32, i32) {
    %c0_i32 = arith.constant 0 : i32
    %c0_i32_0 = arith.constant 0 : i32
    %c0_i32_1 = arith.constant 0 : i32
    return %c0_i32, %c0_i32_0 : i32, i32
  }
  func.func @transform_6(%arg0: i32) -> (i32, i32) {
    %c0_i32 = arith.constant 0 : i32
    %c0_i32_0 = arith.constant 0 : i32
    %c0_i32_1 = arith.constant 0 : i32
    return %c0_i32, %c0_i32_0 : i32, i32
  }
  func.func @transform_7(%arg0: i32) -> (i32, i32) {
    %c0_i32 = arith.constant 0 : i32
    %c0_i32_0 = arith.constant 0 : i32
    return %c0_i32, %arg0 : i32, i32
  }
}

</mosaic_0001>

<bundles_post_ra>
// kernel: critic_forward.1
= control target key start
LH: loop header
LB: loop body
LE: loop exit
PB: predicated region body
PF: predicated region fallthrough
CT: control target
= control target key end

     0   :  { %s803_s0 = inlined_call_operand.vmem [shape: bf16[32,16], index: 0, kind: input, shape index: {}]   ;;  %s804_s1 = inlined_call_operand.vmem [shape: bf16[16,256], index: 1, kind: input, shape index: {}]   ;;  %s805_s2 = inlined_call_operand.vmem [shape: f32[1,256], index: 2, kind: input, shape index: {}]   ;;  %s806_s3 = inlined_call_operand.vmem [shape: bf16[256,256], index: 3, kind: input, shape index: {}]   ;;  %s807_s4 = inlined_call_operand.vmem [shape: f32[1,256], index: 4, kind: input, shape index: {}]   ;;  %s808_s5 = inlined_call_operand.vmem [shape: bf16[1,256], index: 5, kind: input, shape index: {}]   ;;  %s809_s6 = inlined_call_operand.<no memory space> [shape: f32[1,1], index: 6, kind: input, shape index: {}]   ;;  %s810_s7 = inlined_call_operand.hbm [shape: f32[1,32], index: 7, kind: output, shape index: {}]  }
   0x1   :  { %v12_v0 = vstv %s809_s6 }
   0x2   :  { %13 = vst [vmem:[#allocation2] sm:$0x1] %v12_v0 }
   0x3   :  { %v544_v1 = vld [vmem:[%s804_s1 + $0x4] ss:$8 sps:$4 sm:$0xff]   ;;  %v546_v2 = vld [vmem:[%s804_s1] ss:$8 sps:$4 sm:$0xff]   ;;  %v621_v3 = vmov 0   ;;  %vm68_vm0 = vcmask 130048  }
   0x4   :  { %107 = vmatprep.mubr.bf16.mxu0 %v621_v3  ;;  %543 = vset.pattern.permute.xlu0 %v621_v3  ;;  %v547_v4 = vld [vmem:[%s803_s0] sm:$0xff]   ;;  %v552_v7 = vld [vmem:[%s806_s3 + $0x14] ss:$8 sps:$4 sm:$0xff]   ;;  %v554_v8 = vld [vmem:[%s806_s3 + $0x10] ss:$8 sps:$4 sm:$0xff]  }
   0x5   :  { %75 = vmatprep.subr.bf16.mxu0 %v544_v1  ;;  %v549_v5 = vld [vmem:[%s806_s3 + $0x4] ss:$8 sps:$4 sm:$0xff]   ;;  %v551_v6 = vld [vmem:[%s806_s3] ss:$8 sps:$4 sm:$0xff]   ;;  %v558_v12 = vld [vmem:[%s806_s3 + $0x34] ss:$8 sps:$4 sm:$0xff]  }
   0x6   :  { %76 = vmatpush1.bf16.msra.mxu0 %v546_v2  ;;  %344 = vmatprep.subr.bf16.mxu1 %v549_v5  ;;  %v555_v9 = vld [vmem:[%s806_s3 + $0x24] ss:$8 sps:$4 sm:$0xff]   ;;  %v557_v11 = vld [vmem:[%s806_s3 + $0x20] ss:$8 sps:$4 sm:$0xff]   ;;  %v560_v13 = vld [vmem:[%s806_s3 + $0x30] ss:$8 sps:$4 sm:$0xff]  }
   0x7   :  { %345 = vmatpush1.bf16.msra.mxu1 %v551_v6  ;;  %v548_v10 = vld [vmem:[%s803_s0 + $0x8] sm:$0xff]   ;;  %v564_v16 = vld [vmem:[%s806_s3 + $0x54] ss:$8 sps:$4 sm:$0xff]   ;;  %v566_v17 = vld [vmem:[%s806_s3 + $0x50] ss:$8 sps:$4 sm:$0xff]  }
   0x8   :  { %346 = vmatprep.subr.bf16.mxu1 %v552_v7  ;;  %v561_v14 = vld [vmem:[%s806_s3 + $0x44] ss:$8 sps:$4 sm:$0xff]   ;;  %v563_v15 = vld [vmem:[%s806_s3 + $0x40] ss:$8 sps:$4 sm:$0xff]  }
   0x9   :  { %505 = vmatmul.mubr.msk.bf16.vlgmr.msra.gmra.mrb[0].mxu0 %vm68_vm0, %v547_v4 }
   0xa   :  { %117 = vmatprep.mubr.bf16.mxu0 %v621_v3 }
   0xb   :  { %347 = vmatpush1.bf16.msra.mxu1 %v554_v8 }
   0xc   :  { %348 = vmatprep.subr.bf16.mxu1 %v555_v9 }
   0xf   :  { %349 = vmatpush1.bf16.msra.mxu1 %v557_v11 }
  0x10   :  { %350 = vmatprep.subr.bf16.mxu1 %v558_v12 }
  0x11   :  { %506 = vmatmul.mubr.msk.bf16.gmra.mrb[4].mxu0 %vm68_vm0, %v548_v10 }
  0x13   :  { %351 = vmatpush1.bf16.msra.mxu1 %v560_v13 }
  0x14   :  { %352 = vmatprep.subr.bf16.mxu1 %v561_v14 }
  0x17   :  { %353 = vmatpush1.bf16.msra.mxu1 %v563_v15 }
  0x18   :  { %14 = vsyncpa [#allocation4], 0  ;;  %354 = vmatprep.subr.bf16.mxu1 %v564_v16  ;;  %v567_v18 = vld [vmem:[%s806_s3 + $0x64] ss:$8 sps:$4 sm:$0xff]   ;;  %v569_v19 = vld [vmem:[%s806_s3 + $0x60] ss:$8 sps:$4 sm:$0xff]   ;;  %v38_v38 = vlaneseq }
  0x19   :  { %v570_v20 = vld [vmem:[%s806_s3 + $0x74] ss:$8 sps:$4 sm:$0xff]   ;;  %v572_v21 = vld [vmem:[%s806_s3 + $0x70] ss:$8 sps:$4 sm:$0xff]   ;;  %v573_v22 = vld [vmem:[%s806_s3 + $0x84] ss:$8 sps:$4 sm:$0xff]  }
  0x1a   :  { %v575_v23 = vld [vmem:[%s806_s3 + $0x80] ss:$8 sps:$4 sm:$0xff]   ;;  %v576_v24 = vld [vmem:[%s806_s3 + $0x94] ss:$8 sps:$4 sm:$0xff]   ;;  %v578_v25 = vld [vmem:[%s806_s3 + $0x90] ss:$8 sps:$4 sm:$0xff]  }
  0x1b   :  { %355 = vmatpush1.bf16.msra.mxu1 %v566_v17  ;;  %v579_v26 = vld [vmem:[%s806_s3 + $0xa4] ss:$8 sps:$4 sm:$0xff]   ;;  %v581_v27 = vld [vmem:[%s806_s3 + $0xa0] ss:$8 sps:$4 sm:$0xff]   ;;  %v582_v28 = vld [vmem:[%s806_s3 + $0xb4] ss:$8 sps:$4 sm:$0xff]  }
  0x1c   :  { %356 = vmatprep.subr.bf16.mxu1 %v567_v18  ;;  %v584_v29 = vld [vmem:[%s806_s3 + $0xb0] ss:$8 sps:$4 sm:$0xff]   ;;  %v585_v30 = vld [vmem:[%s806_s3 + $0xc4] ss:$8 sps:$4 sm:$0xff]   ;;  %v587_v31 = vld [vmem:[%s806_s3 + $0xc0] ss:$8 sps:$4 sm:$0xff]  }
  0x1d   :  { %v588_v32 = vld [vmem:[%s806_s3 + $0xd4] ss:$8 sps:$4 sm:$0xff]   ;;  %v590_v33 = vld [vmem:[%s806_s3 + $0xd0] ss:$8 sps:$4 sm:$0xff]   ;;  %v591_v34 = vld [vmem:[%s806_s3 + $0xe4] ss:$8 sps:$4 sm:$0xff]  }
  0x1e   :  { %v593_v35 = vld [vmem:[%s806_s3 + $0xe0] ss:$8 sps:$4 sm:$0xff]   ;;  %v594_v36 = vld [vmem:[%s806_s3 + $0xf4] ss:$8 sps:$4 sm:$0xff]   ;;  %v596_v37 = vld [vmem:[%s806_s3 + $0xf0] ss:$8 sps:$4 sm:$0xff]  }
  0x1f   :  { %357 = vmatpush1.bf16.msra.mxu1 %v569_v19  ;;  %v39_v39 = vshrl.u32 %v38_v38, 7  ;;  %v36_v41 = vld [vmem:[%s805_s2] sm:$0x3]  ;;  %v622_v9 = vmov 1966171168   ;;  %vm485_vm1 = vcmask 253952  }
  0x20   :  { %358 = vmatprep.subr.bf16.mxu1 %v570_v20  ;;  %v430_v10 = vunpack.c.l.s4 %v622_v9  ;;  %v539_v11 = vld.sshfl [vmem:[%s808_s5] sm:$0x11 pattern:$0x75316420] }
  0x21   :  { %v777_v40 = vsub.s32 0, %v39_v39  ;;  %v44_v42 = vsub.s32 1, %v39_v39  ;;  %v428_v13 = vcombine.high %v539_v11, %v539_v11  ;;  %v410_v17 = vld [vmem:[#allocation2] sm:$0x1] }
  0x22   :  { %v431_v12 = vunpack.c.0.s8 %v430_v10  ;;  %413 = vperm.xlu0 %543, %v410_v17   ;;  %v172_v18 = vld [vmem:[%s807_s4] sm:$0x3]  ;;  %s623_s4 = smov [#allocation3]  }
  0x23   :  { %359 = vmatpush1.bf16.msra.mxu1 %v572_v21  ;;  %v41_v43 = vrot.slane %v36_v41, %v777_v40  ;;  %v45_v44 = vrot.slane %v36_v41, %v44_v42  ;;  %v177_v19 = vrot.slane %v172_v18, %v777_v40  ;;  %v181_v20 = vrot.slane %v172_v18, %v44_v42  ;;  %s493_s5 = sshll.u32 %s623_s4, 4  ;;  %s494_s5 = int_to_ptr.vmem [resolvable:$true] %s493_s5 }
  0x24   :  { %360 = vmatprep.subr.bf16.mxu1 %v573_v22  ;;  %v434_v14 = vsub.s32 %v431_v12, %v39_v39  ;;  %s597_s25 = scalar_lea.vmem %s494_s5, 16  ;;  %s601_s0 = scalar_lea.vmem %s494_s5, 32 }
  0x25   :  { %p598_p0 = scmp.ne.s32.totalorder %s494_s5, %s597_s25  ;;  %p602_p1 = scmp.lt.s32.totalorder %s494_s5, %s494_s5 }
  0x26   :  { %v435_v15 = vrot.slane %v539_v11, %v434_v14  ;;  %v442_v16 = vrot.slane %v428_v13, %v434_v14  ;;  %p603_p2 = scmp.lt.s32.totalorder %s601_s0, %s597_s25 }
  0x27   :  { %361 = vmatpush1.bf16.msra.mxu1 %v575_v23 }
  0x28   :  { %362 = vmatprep.subr.bf16.mxu1 %v576_v24  ;;  %477 = vmatprep.mubr.bf16.mxu0 %v442_v16  ;;  %p604_p3 = por %p603_p2, %p602_p1 }
  0x2a   :  { %p605_p4 = pnand %p604_p3, %p598_p0 }
  0x2b   :  { %363 = vmatpush1.bf16.msra.mxu1 %v578_v25 }
  0x2c   :  { %364 = vmatprep.subr.bf16.mxu1 %v579_v26 }
  0x2f   :  { %365 = vmatpush1.bf16.msra.mxu1 %v581_v27 }
  0x30   :  { %366 = vmatprep.subr.bf16.mxu1 %v582_v28 }
  0x33   :  { %367 = vmatpush1.bf16.msra.mxu1 %v584_v29 }
  0x34   :  { %368 = vmatprep.subr.bf16.mxu1 %v585_v30 }
  0x37   :  { %369 = vmatpush1.bf16.msra.mxu1 %v587_v31 }
  0x38   :  { %370 = vmatprep.subr.bf16.mxu1 %v588_v32 }
  0x3b   :  { %371 = vmatpush1.bf16.msra.mxu1 %v590_v33 }
  0x3c   :  { %372 = vmatprep.subr.bf16.mxu1 %v591_v34 }
  0x3f   :  { %373 = vmatpush1.bf16.msra.mxu1 %v593_v35 }
  0x40   :  { %374 = vmatprep.subr.bf16.mxu1 %v594_v36 }
  0x43   :  { %375 = vmatpush1.bf16.msra.mxu1 %v596_v37 }
  0xdc   :  { %v109_v45 = vpop.f32.mrb[0].mxu0 }
  0xdd   :  { %v110_v46 = vadd.f32 %v109_v45, %v41_v43  ;;  %v111_v47 = vpop.f32.mrb[1].mxu0 }
  0xde   :  { %v112_v48 = vadd.f32 %v111_v47, %v45_v44  ;;  %v113_v49 = vpop.f32.mrb[2].mxu0 }
  0xdf   :  { %v114_v50 = vadd.f32 %v113_v49, %v41_v43  ;;  %v115_v51 = vpop.f32.mrb[3].mxu0  ;;  %v128_v53 = vmax.f32 %v110_v46, 0.0 }
  0xe0   :  { %v116_v52 = vadd.f32 %v115_v51, %v45_v44  ;;  %v129_v55 = vmax.f32 %v112_v48, 0.0 }
  0xe1   :  { %v130_v54 = vmax.f32 %v114_v50, 0.0  ;;  %v414_v50 = vpop.permute.xlu0 %413 }
  0xe2   :  { %v131_v56 = vmax.f32 %v116_v52, 0.0  ;;  %v419_v51 = vrot.slane %v414_v50, %v777_v40 }
  0xe3   :  { %v136_v57 = vpack.c.bf16 %v130_v54, %v128_v53 }
  0xe4   :  { %v119_v58 = vpop.f32.mrb[4].mxu0  ;;  %v137_v59 = vpack.c.bf16 %v131_v56, %v129_v55 }
  0xe5   :  { %v120_v60 = vadd.f32 %v119_v58, %v41_v43  ;;  %v121_v61 = vpop.f32.mrb[5].mxu0 }
  0xe6   :  { %v122_v62 = vadd.f32 %v121_v61, %v45_v44  ;;  %v123_v63 = vpop.f32.mrb[6].mxu0  ;;  %376 = vmatprep.mubr.bf16.mxu1 %v137_v59 }
  0xe7   :  { %v124_v0 = vadd.f32 %v123_v63, %v41_v43  ;;  %v125_v1 = vpop.f32.mrb[7].mxu0  ;;  %377 = vmatmul.mubr.bf16.vlgmr.msra.gmra.mrb[0].mxu1 %v136_v57  ;;  %v132_v3 = vmax.f32 %v120_v60, 0.0 }
  0xe8   :  { %v126_v2 = vadd.f32 %v125_v1, %v45_v44  ;;  %v133_v5 = vmax.f32 %v122_v62, 0.0 }
  0xe9   :  { %v134_v4 = vmax.f32 %v124_v0, 0.0 }
  0xea   :  { %v135_v6 = vmax.f32 %v126_v2, 0.0 }
  0xeb   :  { %v138_v7 = vpack.c.bf16 %v134_v4, %v132_v3 }
  0xec   :  { %v139_v8 = vpack.c.bf16 %v135_v6, %v133_v5 }
  0xee   :  { %386 = vmatprep.mubr.bf16.mxu1 %v139_v8 }
  0xef   :  { %387 = vmatmul.mubr.bf16.gmra.mrb[4].mxu1 %v138_v7 }
 0x1ba   :  { %v378_v21 = vpop.f32.mrb[0].mxu1 }
 0x1bb   :  { %v379_v22 = vadd.f32 %v378_v21, %v177_v19  ;;  %v380_v23 = vpop.f32.mrb[1].mxu1 }
 0x1bc   :  { %v381_v24 = vadd.f32 %v380_v23, %v181_v20  ;;  %v382_v25 = vpop.f32.mrb[2].mxu1 }
 0x1bd   :  { %v383_v26 = vadd.f32 %v382_v25, %v177_v19  ;;  %v384_v27 = vpop.f32.mrb[3].mxu1  ;;  %v397_v29 = vmax.f32 %v379_v22, 0.0 }
 0x1be   :  { %v385_v28 = vadd.f32 %v384_v27, %v181_v20  ;;  %v398_v31 = vmax.f32 %v381_v24, 0.0 }
 0x1bf   :  { %v399_v30 = vmax.f32 %v383_v26, 0.0 }
 0x1c0   :  { %v400_v32 = vmax.f32 %v385_v28, 0.0 }
 0x1c1   :  { %v405_v33 = vpack.c.bf16 %v399_v30, %v397_v29 }
 0x1c2   :  { %v406_v34 = vpack.c.bf16 %v400_v32, %v398_v31  ;;  %v388_v35 = vpop.f32.mrb[4].mxu1 }
 0x1c3   :  { %v389_v36 = vadd.f32 %v388_v35, %v177_v19  ;;  %v390_v37 = vpop.f32.mrb[5].mxu1 }
 0x1c4   :  { %v391_v38 = vadd.f32 %v390_v37, %v181_v20  ;;  %v392_v39 = vpop.f32.mrb[6].mxu1  ;;  %445 = vmatprep.subr.bf16.mxu0 %v406_v34 }
 0x1c5   :  { %v393_v41 = vadd.f32 %v392_v39, %v177_v19  ;;  %v394_v42 = vpop.f32.mrb[7].mxu1  ;;  %446 = vmatpush1.bf16.xpose.msra.mxu0 %v405_v33  ;;  %v401_v44 = vmax.f32 %v389_v36, 0.0 }
 0x1c6   :  { %v395_v43 = vadd.f32 %v394_v42, %v181_v20  ;;  %v402_v46 = vmax.f32 %v391_v38, 0.0 }
 0x1c7   :  { %v403_v45 = vmax.f32 %v393_v41, 0.0 }
 0x1c8   :  { %v404_v47 = vmax.f32 %v395_v43, 0.0 }
 0x1c9   :  { %v407_v48 = vpack.c.bf16 %v403_v45, %v401_v44 }
 0x1ca   :  { %v408_v49 = vpack.c.bf16 %v404_v47, %v402_v46 }
 0x1cc   :  { %447 = vmatprep.subr.bf16.mxu0 %v408_v49 }
 0x1cd   :  { %448 = vmatpush1.bf16.xpose.msra.mxu0 %v407_v48 }
 0x1d4   :  { %478 = vmatmul.mubr.bf16.vlgmr.msra.gmra.mrb[8].mxu0 %v435_v15 }
 0x2a7   :  { %v479_v52 = vpop.f32.mrb[8].mxu0 }
 0x2a8   :  { %v480_v53 = vadd.f32 %v479_v52, %v419_v51  ;;  %v481_v54 = vpop.f32.mrb[9].mxu0 }
 0x2a9   :  { %v482_v55 = vpop.f32.mrb[10].mxu0 }
 0x2aa   :  { %v483_v56 = vpop.f32.mrb[11].mxu0  ;;  %486 = vst.msk [vmem:[#allocation3] sm:$0x1] %vm485_vm1, %v480_v53 }
 0x2ab   :  { %608 = shalt.err (!%p605_p4)
}
 0x2ac   :  { %s609_s28 = scalar_lea.hbm %s810_s7, 16 }
 0x2ad   :  { %p610_p5 = scmp.ne.s32.totalorder %s810_s7, %s609_s28  ;;  %p613_p6 = scmp.lt.u32.totalorder %s609_s28, %s810_s7 }
 0x2af   :  { %p615_p7 = pnand %p613_p6, %p610_p5 }
 0x2b1   :  { %618 = shalt.err (!%p615_p7)
}
 0x2b2   :  { %496 = dma.vmem_to_hbm [thread:$0]  %s494_s5, 16, %s810_s7, [#allocation4]  }
 0x2b3   :  { %619 = dma.done.wait [#allocation4], 16  }
 0x2b4   :  { %620 = vsyncadd [#allocation4], 4294967280 }
 0x2b5   :  { %500 = vsyncpa [#allocation4], 1 }

</bundles_post_ra>
